<compile_context>
chip_gen: v6e
topology: v6e:2x2x1
jax: 0.10.0
libtpu: 0.0.40
codegen_flags: <defaults>
</compile_context>

<pallas_src>
import functools
import math

import jax
import jax.numpy as jnp
import numpy as np
from jax.experimental import pallas as pl
from jax.experimental.pallas import tpu as pltpu


def _same_pad(dim, k, s):
    """TF-style SAME padding: returns (pad_lo, pad_hi, out_dim)."""
    out = -(-dim // s)
    pad = max((out - 1) * s + k - dim, 0)
    return pad // 2, pad - pad // 2, out


def _round_up(v, m):
    return ((v + m - 1) // m) * m


# ----------------------------- Pallas kernel --------------------------------

def _fused_down_block_kernel(patch_ref, gamma_ref, beta_ref, wf_ref, w1_ref,
                             w2_ref, o_ref, y_ref, *, c_out, lane_chunk,
                             mm_dtype):
    """GDN -> [conv0 (KxK,stride s) + strided 1x1 shortcut as ONE fused matmul]
       -> conv1 (1x1) -> GELU -> conv2 (1x1), for one lane-dense pixel tile.

       Layout (channels on sublanes, pixels on lanes):
         patch_ref : (KK, C_in, TP)     raw-input im2col taps (already zero padded)
         y_ref     : (KK*C_in, TP)      VMEM scratch of GDN'd taps (matmul dtype)
         wf_ref    : (2*C_out, KK*C_in) conv0 weights stacked over taps, shortcut
                                        folded in as C_out extra rows
         o_ref     : (C_out, TP)
    """
    kk_total, c_in, tp = patch_ref.shape

    gamma = gamma_ref[...]                                     # (C_in, C_in) f32
    # Hoist the loop-invariant beta broadcast out of the unrolled tap loop.
    beta_b = jnp.broadcast_to(beta_ref[...], (c_in, tp))       # (C_in, TP) f32

    # GDN per tap, f32 math.  GDN(0) == 0, so SAME zero-padding of raw x commutes.
    for kk in range(kk_total):
        xk = patch_ref[kk].astype(jnp.float32)                 # (C_in, TP)
        norm = jnp.dot(gamma, xk * xk,
                       preferred_element_type=jnp.float32) + beta_b
        yk = xk * jax.lax.rsqrt(norm)
        y_ref[kk * c_in:(kk + 1) * c_in, :] = yk.astype(y_ref.dtype)

    # ONE fused MXU matmul over all KK*C_in taps:
    #   rows [0:C_out)        -> conv0 output t
    #   rows [C_out:2*C_out)  -> strided 1x1 shortcut sc
    ts = jnp.dot(wf_ref[...], y_ref[...],
                 preferred_element_type=jnp.float32)           # (2*C_out, TP) f32
    t = ts[:c_out, :]
    sc = ts[c_out:, :]

    w1 = w1_ref[...]
    w2 = w2_ref[...]
    inv_sqrt2 = 1.0 / math.sqrt(2.0)

    # conv1 -> GELU -> conv2 tail, sub-tiled over lanes so the (C_hidden, TP) hidden
    # activation never materializes as one big VMEM temporary.
    for j in range(tp // lane_chunk):
        lo, hi = j * lane_chunk, (j + 1) * lane_chunk
        tc = t[:, lo:hi].astype(mm_dtype)
        h = jnp.dot(w1, tc, preferred_element_type=jnp.float32)
        h = 0.5 * h * (1.0 + jax.lax.erf(h * inv_sqrt2))       # exact GELU, f32
        yj = jnp.dot(w2, h.astype(mm_dtype),
                     preferred_element_type=jnp.float32)
        o_ref[:, lo:hi] = (yj + sc[:, lo:hi]).astype(o_ref.dtype)


# ----------------------------- wrapper ---------------------------------------

def _tpu_vmem_capacity_bytes():
    try:
        info = pltpu.get_tpu_info()
        cap = int(getattr(info, "vmem_capacity_bytes", 0))
        if cap > 0:
            return cap
    except Exception:
        pass
    return 64 * 1024 * 1024          # conservative (v7x-class) fallback


def _make_patch_spec(block_shape, index_map, n_buf):
    """Patch-stream BlockSpec; request a deeper pipeline (3 buffers) on v5e/v6e."""
    if n_buf > 2:
        try:
            return pl.BlockSpec(block_shape, index_map,
                                pipeline_mode=pl.Buffered(n_buf))
        except Exception:
            pass
    return pl.BlockSpec(block_shape, index_map)


def downsampling_res_block_2d(x_nchw, params, kernel_size, stride,
                              tile=2048, matmul_dtype=jnp.bfloat16):
    """Forward pass of DownSamplingResBlock2D.  Input/output layout: NCHW (PyTorch)."""
    N, C_in, H, W = x_nchw.shape
    K, s = kernel_size, stride
    w0 = params["w_conv0"]                       # (C_out, C_in, K, K) PyTorch layout
    C_out = w0.shape[0]
    C_hidden = params["w_conv1"].shape[0]
    KK = K * K

    mm_dtype = jnp.dtype(matmul_dtype)
    use_bf16 = (mm_dtype == jnp.dtype(jnp.bfloat16))
    in_dtype = jnp.dtype(jnp.bfloat16) if use_bf16 else jnp.dtype(x_nchw.dtype)

    pbh, peh, OH = _same_pad(H, K, s)
    pbw, pew, OW = _same_pad(W, K, s)
    P = N * OH * OW

    # ---- im2col glue: ONE channels-first relayout, then KK strided slices ----
    xp = jnp.pad(x_nchw, ((0, 0), (0, 0), (pbh, peh), (pbw, pew)))
    xcf = jnp.transpose(xp, (1, 0, 2, 3))        # (C_in, N, Hp, Wp)
    taps = []
    for kh in range(K):
        for kw in range(K):
            sl = xcf[:, :, kh:kh + (OH - 1) * s + 1:s, kw:kw + (OW - 1) * s + 1:s]
            taps.append(sl.reshape(C_in, P))
    patches = jnp.stack(taps, axis=0).astype(in_dtype)   # (KK, C_in, P)

    # ---- generation-aware VMEM budget and tile sizing ----
    vmem_cap = _tpu_vmem_capacity_bytes()
    small_vmem = vmem_cap <= 64 * 1024 * 1024            # v7x-class TensorCore
    vmem_limit = (48 if small_vmem else 100) * 1024 * 1024
    n_buf = 2 if small_vmem else 3                       # deeper patch pipeline on v5e/v6e

    in_b = in_dtype.itemsize
    mm_b = mm_dtype.itemsize
    out_b = jnp.dtype(x_nchw.dtype).itemsize
    per_lane = (n_buf * KK * C_in * in_b                  # pipelined patch buffers
                + KK * C_in * mm_b                        # GDN'd tap scratch
                + 2 * C_out * out_b                       # double-buffered output
                + (4 * C_out + C_hidden) * 4)             # ts / hidden-chunk f32 temps
    tp_cap = max(128, ((vmem_limit // 2) // per_lane) // 128 * 128)

    # keep >= 4 grid steps when possible (megacore sharding + DMA/compute overlap)
    tp = max(128, min(int(tile), tp_cap, _round_up(-(-P // 4), 128)))
    tp = _round_up(tp, 128)
    P_pad = _round_up(P, tp)
    if P_pad > P:
        patches = jnp.pad(patches, ((0, 0), (0, 0), (0, P_pad - P)))

    # lane sub-tile for the conv1->GELU->conv2 tail (largest divisor of tp <= 512)
    lane_chunk = tp
    for c in (512, 384, 256, 128):
        if tp % c == 0:
            lane_chunk = min(tp, c)
            break

    # ---- weights (GDN params stay f32; matmul weights in matmul dtype) ----
    gamma = params["gamma"].astype(jnp.float32)                # (C_in, C_in)
    beta = params["beta"].reshape(C_in, 1).astype(jnp.float32)

    # conv0 weight stacked over taps; column order (kk, c) matches the Y scratch rows.
    w0_flat = jnp.transpose(w0, (0, 2, 3, 1)).reshape(C_out, KK * C_in)
    # Fold the stride-s 1x1 shortcut in: for a stride-s 1x1 Conv2dSame (SAME pad == 0
    # when k == 1) the input pixel is exactly conv0's (pad_lo_h, pad_lo_w) im2col tap.
    sc_tap = pbh * K + pbw
    wsc = params["w_sc"][:, :, 0, 0]                           # (C_out, C_in)
    wsc_rows = jnp.zeros((C_out, KK * C_in), jnp.float32).at[
        :, sc_tap * C_in:(sc_tap + 1) * C_in].set(wsc)
    w_fused = jnp.concatenate([w0_flat, wsc_rows], axis=0).astype(mm_dtype)

    w1 = params["w_conv1"][:, :, 0, 0].astype(mm_dtype)        # (C_hidden, C_out)
    w2 = params["w_conv2"][:, :, 0, 0].astype(mm_dtype)        # (C_out, C_hidden)

    flops = int(P_pad) * (KK * 2 * C_in * C_in
                          + 2 * (2 * C_out) * (KK * C_in)
                          + 2 * C_hidden * C_out + 2 * C_out * C_hidden)
    transcendentals = int(P_pad) * (KK * C_in + C_hidden)
    bytes_accessed = (int(P_pad) * (KK * C_in * in_b + C_out * out_b)
                      + 4 * C_in * (C_in + 1)
                      + mm_b * (2 * C_out * KK * C_in + 2 * C_hidden * C_out))

    kernel = functools.partial(_fused_down_block_kernel, c_out=C_out,
                               lane_chunk=lane_chunk, mm_dtype=mm_dtype)

    def _call(nb):
        return pl.pallas_call(
            kernel,
            out_shape=jax.ShapeDtypeStruct((C_out, P_pad), x_nchw.dtype),
            grid=(P_pad // tp,),
            in_specs=[
                _make_patch_spec((KK, C_in, tp), lambda i: (0, 0, i), nb),
                pl.BlockSpec((C_in, C_in), lambda i: (0, 0)),          # gamma
                pl.BlockSpec((C_in, 1), lambda i: (0, 0)),             # beta
                pl.BlockSpec((2 * C_out, KK * C_in), lambda i: (0, 0)),  # fused conv0+sc
                pl.BlockSpec((C_hidden, C_out), lambda i: (0, 0)),     # conv1 weight
                pl.BlockSpec((C_out, C_hidden), lambda i: (0, 0)),     # conv2 weight
            ],
            out_specs=pl.BlockSpec((C_out, tp), lambda i: (0, i)),     # lane-dense output
            scratch_shapes=[pltpu.VMEM((KK * C_in, tp), mm_dtype)],    # GDN'd tap slab
            compiler_params=pltpu.CompilerParams(
                dimension_semantics=("parallel",),
                vmem_limit_bytes=vmem_limit),
            cost_estimate=pl.CostEstimate(flops=flops,
                                          transcendentals=transcendentals,
                                          bytes_accessed=bytes_accessed),
        )(patches, gamma, beta, w_fused, w1, w2)

    try:
        out2d = _call(n_buf)
    except Exception:
        if n_buf <= 2:
            raise
        out2d = _call(2)          # fall back to plain double-buffering

    out = out2d[:, :P].reshape(C_out, N, OH, OW)
    return jnp.transpose(out, (1, 0, 2, 3))      # back to NCHW


# ----------------------------- pure-JAX reference ----------------------------

def _ref_forward(x_nchw, params, K, s):
    x = jnp.transpose(x_nchw, (0, 2, 3, 1))      # NHWC
    norm = jnp.einsum("nhwc,dc->nhwd", x * x, params["gamma"]) + params["beta"]
    y = x / jnp.sqrt(norm)                       # GDN

    def conv_same(inp, w, k, st):
        h, wd = inp.shape[1], inp.shape[2]
        pbh, peh, _ = _same_pad(h, k, st)
        pbw, pew, _ = _same_pad(wd, k, st)
        return jax.lax.conv_general_dilated(
            inp, w, window_strides=(st, st),
            padding=[(pbh, peh), (pbw, pew)],
            dimension_numbers=("NHWC", "OIHW", "NHWC"))

    sc = conv_same(y, params["w_sc"], 1, s)
    t = conv_same(y, params["w_conv0"], K, s)
    h = jnp.einsum("nhwc,dc->nhwd", t, params["w_conv1"][:, :, 0, 0])
    h = 0.5 * h * (1.0 + jax.lax.erf(h / jnp.sqrt(2.0)))
    o = jnp.einsum("nhwc,dc->nhwd", h, params["w_conv2"][:, :, 0, 0])
    return jnp.transpose(o + sc, (0, 3, 1, 2))


# ----------------------------------- main ------------------------------------

def _make_params(key, c_in, c_out, K):
    c_hidden = c_out * 4
    ks = jax.random.split(key, 5)
    return {
        # GDN parameters (already reparameterized: beta > 0, gamma >= 0)
        "beta": jnp.ones((c_in,), jnp.float32),
        "gamma": 0.1 * jnp.eye(c_in, dtype=jnp.float32)
                 + 0.01 * jax.random.uniform(ks[0], (c_in, c_in), jnp.float32),
        # Conv2d weights, PyTorch layout (out_channels, in_channels, kH, kW), bias=False
        "w_sc": 0.2 * jax.random.normal(ks[1], (c_out, c_in, 1, 1), jnp.float32),
        "w_conv0": 0.2 * jax.random.normal(ks[2], (c_out, c_in, K, K), jnp.float32),
        "w_conv1": 0.2 * jax.random.normal(ks[3], (c_hidden, c_out, 1, 1), jnp.float32),
        "w_conv2": 0.2 * jax.random.normal(ks[4], (c_out, c_hidden, 1, 1), jnp.float32),
    }


if __name__ == "__main__":
    key = jax.random.PRNGKey(0)
    k_p1, k_x1, k_p2, k_x2 = jax.random.split(key, 4)

    # --- config 1: small shapes consistent with the module ---
    c_in, c_out, K, s = 4, 4, 3, 2
    N, H, W = 2, 16, 16
    params = _make_params(k_p1, c_in, c_out, K)
    x = jax.random.normal(k_x1, (N, c_in, H, W), jnp.float32)
    ref = _ref_forward(x, params, K, s)

    # exact-math path (f32 matmuls): tight validation of the fused semantics
    out_f32 = jax.block_until_ready(
        downsampling_res_block_2d(x, params, K, s, matmul_dtype=jnp.float32))
    OH, OW = -(-H // s), -(-W // s)
    assert out_f32.shape == (N, c_out, OH, OW), out_f32.shape
    np.testing.assert_allclose(np.asarray(out_f32), np.asarray(ref),
                               rtol=1e-4, atol=1e-4)

    # default fast path (bf16 matmul operands + bf16 patch stream, f32 accumulation)
    out_bf16 = jax.block_until_ready(downsampling_res_block_2d(x, params, K, s))
    np.testing.assert_allclose(np.asarray(out_bf16), np.asarray(ref),
                               rtol=5e-2, atol=5e-2)

    # --- config 2: odd spatial size, K=5 (nonzero pad_lo, pixel count padded to 128) ---
    c_in2, c_out2, K2, s2 = 4, 8, 5, 2
    N2, H2, W2 = 1, 11, 11
    params2 = _make_params(k_p2, c_in2, c_out2, K2)
    x2 = jax.random.normal(k_x2, (N2, c_in2, H2, W2), jnp.float32)
    out2 = jax.block_until_ready(
        downsampling_res_block_2d(x2, params2, K2, s2, matmul_dtype=jnp.float32))
    ref2 = _ref_forward(x2, params2, K2, s2)
    np.testing.assert_allclose(np.asarray(out2), np.asarray(ref2),
                               rtol=1e-4, atol=1e-4)

    print("KERNEL_OK")
</pallas_src>

<mosaic_0001>
module attributes {stable_mosaic.version = 11 : i64} {
  func.func @_fused_down_block_kernel(%arg0: i32, %arg1: memref<9x4x128xf32, #tpu.memory_space<vmem>>, %arg2: memref<4x4xf32, #tpu.memory_space<vmem>>, %arg3: memref<4x1xf32, #tpu.memory_space<vmem>>, %arg4: memref<8x36xf32, #tpu.memory_space<vmem>>, %arg5: memref<16x4xf32, #tpu.memory_space<vmem>>, %arg6: memref<4x16xf32, #tpu.memory_space<vmem>>, %arg7: memref<4x128xf32, #tpu.memory_space<vmem>>, %arg8: memref<36x128xf32, #tpu.memory_space<vmem>>) attributes {dimension_semantics = [#tpu.dimension_semantics<parallel>], iteration_bounds = array<i64: 1>, scalar_prefetch = 0 : i64, scratch_operands = 1 : i64, tpu.core_type = #tpu.core_type<tc>, window_params = [{transform_indices = @transform_0, window_bounds = array<i64: 9, 4, 128>}, {pipeline_mode = #tpu.pipeline_mode<synchronous>, transform_indices = @transform_1, window_bounds = array<i64: 4, 4>}, {pipeline_mode = #tpu.pipeline_mode<synchronous>, transform_indices = @transform_2, window_bounds = array<i64: 4, 1>}, {pipeline_mode = #tpu.pipeline_mode<synchronous>, transform_indices = @transform_3, window_bounds = array<i64: 8, 36>}, {pipeline_mode = #tpu.pipeline_mode<synchronous>, transform_indices = @transform_4, window_bounds = array<i64: 16, 4>}, {pipeline_mode = #tpu.pipeline_mode<synchronous>, transform_indices = @transform_5, window_bounds = array<i64: 4, 16>}, {transform_indices = @transform_6, window_bounds = array<i64: 4, 128>}]} {
    %c0 = arith.constant 0 : index
    %c0_0 = arith.constant 0 : index
    %0 = vector.load %arg2[%c0, %c0_0] : memref<4x4xf32, #tpu.memory_space<vmem>>, vector<4x4xf32>
    %c0_1 = arith.constant 0 : index
    %c0_2 = arith.constant 0 : index
    %1 = vector.load %arg3[%c0_1, %c0_2] : memref<4x1xf32, #tpu.memory_space<vmem>>, vector<4x1xf32>
    %2 = vector.shape_cast %1 : vector<4x1xf32> to vector<4x1xf32>
    %3 = vector.broadcast %2 : vector<4x1xf32> to vector<4x128xf32>
    %c0_3 = arith.constant 0 : index
    %c0_4 = arith.constant 0 : index
    %c0_5 = arith.constant 0 : index
    %4 = vector.load %arg1[%c0_3, %c0_4, %c0_5] : memref<9x4x128xf32, #tpu.memory_space<vmem>>, vector<1x4x128xf32>
    %5 = vector.shape_cast %4 : vector<1x4x128xf32> to vector<4x128xf32>
    %6 = arith.mulf %5, %5 : vector<4x128xf32>
    %cst = arith.constant dense<0.000000e+00> : vector<4x128xf32>
    %7 = tpu.matmul %0, %6, %cst {dimension_numbers = #tpu.dot_dimension_numbers<[1], [0], [0], [1], [0, 0, 1, 1], [], []>} : vector<4x4xf32>, vector<4x128xf32>, vector<4x128xf32> -> vector<4x128xf32>
    %8 = arith.addf %7, %3 : vector<4x128xf32>
    %9 = math.rsqrt %8 : vector<4x128xf32>
    %10 = arith.mulf %5, %9 : vector<4x128xf32>
    %c0_6 = arith.constant 0 : index
    %c0_7 = arith.constant 0 : index
    %11 = vector.load %arg8[%c0_6, %c0_7] : memref<36x128xf32, #tpu.memory_space<vmem>>, vector<4x128xf32>
    tpu.vector_store %arg8[%c0_6, %c0_7], %10 {strides = array<i32>} : memref<36x128xf32, #tpu.memory_space<vmem>>, vector<4x128xf32>,
    %c1 = arith.constant 1 : index
    %c0_8 = arith.constant 0 : index
    %c0_9 = arith.constant 0 : index
    %12 = vector.load %arg1[%c1, %c0_8, %c0_9] : memref<9x4x128xf32, #tpu.memory_space<vmem>>, vector<1x4x128xf32>
    %13 = vector.shape_cast %12 : vector<1x4x128xf32> to vector<4x128xf32>
    %14 = arith.mulf %13, %13 : vector<4x128xf32>
    %cst_10 = arith.constant dense<0.000000e+00> : vector<4x128xf32>
    %15 = tpu.matmul %0, %14, %cst_10 {dimension_numbers = #tpu.dot_dimension_numbers<[1], [0], [0], [1], [0, 0, 1, 1], [], []>} : vector<4x4xf32>, vector<4x128xf32>, vector<4x128xf32> -> vector<4x128xf32>
    %16 = arith.addf %15, %3 : vector<4x128xf32>
    %17 = math.rsqrt %16 : vector<4x128xf32>
    %18 = arith.mulf %13, %17 : vector<4x128xf32>
    %c4 = arith.constant 4 : index
    %c0_11 = arith.constant 0 : index
    %19 = vector.load %arg8[%c4, %c0_11] : memref<36x128xf32, #tpu.memory_space<vmem>>, vector<4x128xf32>
    tpu.vector_store %arg8[%c4, %c0_11], %18 {strides = array<i32>} : memref<36x128xf32, #tpu.memory_space<vmem>>, vector<4x128xf32>,
    %c2 = arith.constant 2 : index
    %c0_12 = arith.constant 0 : index
    %c0_13 = arith.constant 0 : index
    %20 = vector.load %arg1[%c2, %c0_12, %c0_13] : memref<9x4x128xf32, #tpu.memory_space<vmem>>, vector<1x4x128xf32>
    %21 = vector.shape_cast %20 : vector<1x4x128xf32> to vector<4x128xf32>
    %22 = arith.mulf %21, %21 : vector<4x128xf32>
    %cst_14 = arith.constant dense<0.000000e+00> : vector<4x128xf32>
    %23 = tpu.matmul %0, %22, %cst_14 {dimension_numbers = #tpu.dot_dimension_numbers<[1], [0], [0], [1], [0, 0, 1, 1], [], []>} : vector<4x4xf32>, vector<4x128xf32>, vector<4x128xf32> -> vector<4x128xf32>
    %24 = arith.addf %23, %3 : vector<4x128xf32>
    %25 = math.rsqrt %24 : vector<4x128xf32>
    %26 = arith.mulf %21, %25 : vector<4x128xf32>
    %c8 = arith.constant 8 : index
    %c0_15 = arith.constant 0 : index
    %27 = vector.load %arg8[%c8, %c0_15] : memref<36x128xf32, #tpu.memory_space<vmem>>, vector<4x128xf32>
    tpu.vector_store %arg8[%c8, %c0_15], %26 {strides = array<i32>} : memref<36x128xf32, #tpu.memory_space<vmem>>, vector<4x128xf32>,
    %c3 = arith.constant 3 : index
    %c0_16 = arith.constant 0 : index
    %c0_17 = arith.constant 0 : index
    %28 = vector.load %arg1[%c3, %c0_16, %c0_17] : memref<9x4x128xf32, #tpu.memory_space<vmem>>, vector<1x4x128xf32>
    %29 = vector.shape_cast %28 : vector<1x4x128xf32> to vector<4x128xf32>
    %30 = arith.mulf %29, %29 : vector<4x128xf32>
    %cst_18 = arith.constant dense<0.000000e+00> : vector<4x128xf32>
    %31 = tpu.matmul %0, %30, %cst_18 {dimension_numbers = #tpu.dot_dimension_numbers<[1], [0], [0], [1], [0, 0, 1, 1], [], []>} : vector<4x4xf32>, vector<4x128xf32>, vector<4x128xf32> -> vector<4x128xf32>
    %32 = arith.addf %31, %3 : vector<4x128xf32>
    %33 = math.rsqrt %32 : vector<4x128xf32>
    %34 = arith.mulf %29, %33 : vector<4x128xf32>
    %c12 = arith.constant 12 : index
    %c0_19 = arith.constant 0 : index
    %35 = vector.load %arg8[%c12, %c0_19] : memref<36x128xf32, #tpu.memory_space<vmem>>, vector<4x128xf32>
    tpu.vector_store %arg8[%c12, %c0_19], %34 {strides = array<i32>} : memref<36x128xf32, #tpu.memory_space<vmem>>, vector<4x128xf32>,
    %c4_20 = arith.constant 4 : index
    %c0_21 = arith.constant 0 : index
    %c0_22 = arith.constant 0 : index
    %36 = vector.load %arg1[%c4_20, %c0_21, %c0_22] : memref<9x4x128xf32, #tpu.memory_space<vmem>>, vector<1x4x128xf32>
    %37 = vector.shape_cast %36 : vector<1x4x128xf32> to vector<4x128xf32>
    %38 = arith.mulf %37, %37 : vector<4x128xf32>
    %cst_23 = arith.constant dense<0.000000e+00> : vector<4x128xf32>
    %39 = tpu.matmul %0, %38, %cst_23 {dimension_numbers = #tpu.dot_dimension_numbers<[1], [0], [0], [1], [0, 0, 1, 1], [], []>} : vector<4x4xf32>, vector<4x128xf32>, vector<4x128xf32> -> vector<4x128xf32>
    %40 = arith.addf %39, %3 : vector<4x128xf32>
    %41 = math.rsqrt %40 : vector<4x128xf32>
    %42 = arith.mulf %37, %41 : vector<4x128xf32>
    %c16 = arith.constant 16 : index
    %c0_24 = arith.constant 0 : index
    %43 = vector.load %arg8[%c16, %c0_24] : memref<36x128xf32, #tpu.memory_space<vmem>>, vector<4x128xf32>
    tpu.vector_store %arg8[%c16, %c0_24], %42 {strides = array<i32>} : memref<36x128xf32, #tpu.memory_space<vmem>>, vector<4x128xf32>,
    %c5 = arith.constant 5 : index
    %c0_25 = arith.constant 0 : index
    %c0_26 = arith.constant 0 : index
    %44 = vector.load %arg1[%c5, %c0_25, %c0_26] : memref<9x4x128xf32, #tpu.memory_space<vmem>>, vector<1x4x128xf32>
    %45 = vector.shape_cast %44 : vector<1x4x128xf32> to vector<4x128xf32>
    %46 = arith.mulf %45, %45 : vector<4x128xf32>
    %cst_27 = arith.constant dense<0.000000e+00> : vector<4x128xf32>
    %47 = tpu.matmul %0, %46, %cst_27 {dimension_numbers = #tpu.dot_dimension_numbers<[1], [0], [0], [1], [0, 0, 1, 1], [], []>} : vector<4x4xf32>, vector<4x128xf32>, vector<4x128xf32> -> vector<4x128xf32>
    %48 = arith.addf %47, %3 : vector<4x128xf32>
    %49 = math.rsqrt %48 : vector<4x128xf32>
    %50 = arith.mulf %45, %49 : vector<4x128xf32>
    %c20 = arith.constant 20 : index
    %c0_28 = arith.constant 0 : index
    %51 = vector.load %arg8[%c20, %c0_28] : memref<36x128xf32, #tpu.memory_space<vmem>>, vector<4x128xf32>
    tpu.vector_store %arg8[%c20, %c0_28], %50 {strides = array<i32>} : memref<36x128xf32, #tpu.memory_space<vmem>>, vector<4x128xf32>,
    %c6 = arith.constant 6 : index
    %c0_29 = arith.constant 0 : index
    %c0_30 = arith.constant 0 : index
    %52 = vector.load %arg1[%c6, %c0_29, %c0_30] : memref<9x4x128xf32, #tpu.memory_space<vmem>>, vector<1x4x128xf32>
    %53 = vector.shape_cast %52 : vector<1x4x128xf32> to vector<4x128xf32>
    %54 = arith.mulf %53, %53 : vector<4x128xf32>
    %cst_31 = arith.constant dense<0.000000e+00> : vector<4x128xf32>
    %55 = tpu.matmul %0, %54, %cst_31 {dimension_numbers = #tpu.dot_dimension_numbers<[1], [0], [0], [1], [0, 0, 1, 1], [], []>} : vector<4x4xf32>, vector<4x128xf32>, vector<4x128xf32> -> vector<4x128xf32>
    %56 = arith.addf %55, %3 : vector<4x128xf32>
    %57 = math.rsqrt %56 : vector<4x128xf32>
    %58 = arith.mulf %53, %57 : vector<4x128xf32>
    %c24 = arith.constant 24 : index
    %c0_32 = arith.constant 0 : index
    %59 = vector.load %arg8[%c24, %c0_32] : memref<36x128xf32, #tpu.memory_space<vmem>>, vector<4x128xf32>
    tpu.vector_store %arg8[%c24, %c0_32], %58 {strides = array<i32>} : memref<36x128xf32, #tpu.memory_space<vmem>>, vector<4x128xf32>,
    %c7 = arith.constant 7 : index
    %c0_33 = arith.constant 0 : index
    %c0_34 = arith.constant 0 : index
    %60 = vector.load %arg1[%c7, %c0_33, %c0_34] : memref<9x4x128xf32, #tpu.memory_space<vmem>>, vector<1x4x128xf32>
    %61 = vector.shape_cast %60 : vector<1x4x128xf32> to vector<4x128xf32>
    %62 = arith.mulf %61, %61 : vector<4x128xf32>
    %cst_35 = arith.constant dense<0.000000e+00> : vector<4x128xf32>
    %63 = tpu.matmul %0, %62, %cst_35 {dimension_numbers = #tpu.dot_dimension_numbers<[1], [0], [0], [1], [0, 0, 1, 1], [], []>} : vector<4x4xf32>, vector<4x128xf32>, vector<4x128xf32> -> vector<4x128xf32>
    %64 = arith.addf %63, %3 : vector<4x128xf32>
    %65 = math.rsqrt %64 : vector<4x128xf32>
    %66 = arith.mulf %61, %65 : vector<4x128xf32>
    %c28 = arith.constant 28 : index
    %c0_36 = arith.constant 0 : index
    %67 = vector.load %arg8[%c28, %c0_36] : memref<36x128xf32, #tpu.memory_space<vmem>>, vector<4x128xf32>
    tpu.vector_store %arg8[%c28, %c0_36], %66 {strides = array<i32>} : memref<36x128xf32, #tpu.memory_space<vmem>>, vector<4x128xf32>,
    %c8_37 = arith.constant 8 : index
    %c0_38 = arith.constant 0 : index
    %c0_39 = arith.constant 0 : index
    %68 = vector.load %arg1[%c8_37, %c0_38, %c0_39] : memref<9x4x128xf32, #tpu.memory_space<vmem>>, vector<1x4x128xf32>
    %69 = vector.shape_cast %68 : vector<1x4x128xf32> to vector<4x128xf32>
    %70 = arith.mulf %69, %69 : vector<4x128xf32>
    %cst_40 = arith.constant dense<0.000000e+00> : vector<4x128xf32>
    %71 = tpu.matmul %0, %70, %cst_40 {dimension_numbers = #tpu.dot_dimension_numbers<[1], [0], [0], [1], [0, 0, 1, 1], [], []>} : vector<4x4xf32>, vector<4x128xf32>, vector<4x128xf32> -> vector<4x128xf32>
    %72 = arith.addf %71, %3 : vector<4x128xf32>
    %73 = math.rsqrt %72 : vector<4x128xf32>
    %74 = arith.mulf %69, %73 : vector<4x128xf32>
    %c32 = arith.constant 32 : index
    %c0_41 = arith.constant 0 : index
    %75 = vector.load %arg8[%c32, %c0_41] : memref<36x128xf32, #tpu.memory_space<vmem>>, vector<4x128xf32>
    tpu.vector_store %arg8[%c32, %c0_41], %74 {strides = array<i32>} : memref<36x128xf32, #tpu.memory_space<vmem>>, vector<4x128xf32>,
    %c0_42 = arith.constant 0 : index
    %c0_43 = arith.constant 0 : index
    %76 = vector.load %arg4[%c0_42, %c0_43] : memref<8x36xf32, #tpu.memory_space<vmem>>, vector<8x36xf32>
    %c0_44 = arith.constant 0 : index
    %c0_45 = arith.constant 0 : index
    %77 = vector.load %arg8[%c0_44, %c0_45] : memref<36x128xf32, #tpu.memory_space<vmem>>, vector<36x128xf32>
    %cst_46 = arith.constant dense<0.000000e+00> : vector<8x128xf32>
    %78 = tpu.matmul %76, %77, %cst_46 {dimension_numbers = #tpu.dot_dimension_numbers<[1], [0], [0], [1], [0, 0, 1, 1], [], []>} : vector<8x36xf32>, vector<36x128xf32>, vector<8x128xf32> -> vector<8x128xf32>
    %79 = vector.extract_strided_slice %78 {offsets = [0, 0], sizes = [4, 128], strides = [1, 1]} : vector<8x128xf32> to vector<4x128xf32>
    %80 = vector.extract_strided_slice %78 {offsets = [4, 0], sizes = [4, 128], strides = [1, 1]} : vector<8x128xf32> to vector<4x128xf32>
    %c0_47 = arith.constant 0 : index
    %c0_48 = arith.constant 0 : index
    %81 = vector.load %arg5[%c0_47, %c0_48] : memref<16x4xf32, #tpu.memory_space<vmem>>, vector<16x4xf32>
    %c0_49 = arith.constant 0 : index
    %c0_50 = arith.constant 0 : index
    %82 = vector.load %arg6[%c0_49, %c0_50] : memref<4x16xf32, #tpu.memory_space<vmem>>, vector<4x16xf32>
    %cst_51 = arith.constant dense<0.000000e+00> : vector<16x128xf32>
    %83 = tpu.matmul %81, %79, %cst_51 {dimension_numbers = #tpu.dot_dimension_numbers<[1], [0], [0], [1], [0, 0, 1, 1], [], []>} : vector<16x4xf32>, vector<4x128xf32>, vector<16x128xf32> -> vector<16x128xf32>
    %cst_52 = arith.constant 5.000000e-01 : f32
    %84 = vector.broadcast %cst_52 : f32 to vector<16x128xf32>
    %85 = arith.mulf %84, %83 : vector<16x128xf32>
    %cst_53 = arith.constant 0.707106769 : f32
    %86 = vector.broadcast %cst_53 : f32 to vector<16x128xf32>
    %87 = arith.mulf %83, %86 : vector<16x128xf32>
    %88 = math.erf %87 : vector<16x128xf32>
    %cst_54 = arith.constant 1.000000e+00 : f32
    %89 = vector.broadcast %cst_54 : f32 to vector<16x128xf32>
    %90 = arith.addf %89, %88 : vector<16x128xf32>
    %91 = arith.mulf %85, %90 : vector<16x128xf32>
    %cst_55 = arith.constant dense<0.000000e+00> : vector<4x128xf32>
    %92 = tpu.matmul %82, %91, %cst_55 {dimension_numbers = #tpu.dot_dimension_numbers<[1], [0], [0], [1], [0, 0, 1, 1], [], []>} : vector<4x16xf32>, vector<16x128xf32>, vector<4x128xf32> -> vector<4x128xf32>
    %93 = arith.addf %92, %80 : vector<4x128xf32>
    %c0_56 = arith.constant 0 : index
    %c0_57 = arith.constant 0 : index
    %94 = vector.load %arg7[%c0_56, %c0_57] : memref<4x128xf32, #tpu.memory_space<vmem>>, vector<4x128xf32>
    tpu.vector_store %arg7[%c0_56, %c0_57], %93 {strides = array<i32>} : memref<4x128xf32, #tpu.memory_space<vmem>>, vector<4x128xf32>,
    return
  }
  func.func @transform_0(%arg0: i32) -> (i32, i32, i32) {
    %c0_i32 = arith.constant 0 : i32
    %c0_i32_0 = arith.constant 0 : i32
    %c0_i32_1 = arith.constant 0 : i32
    return %c0_i32, %c0_i32_0, %arg0 : i32, i32, i32
  }
  func.func @transform_1(%arg0: i32) -> (i32, i32) {
    %c0_i32 = arith.constant 0 : i32
    %c0_i32_0 = arith.constant 0 : i32
    %c0_i32_1 = arith.constant 0 : i32
    return %c0_i32, %c0_i32_0 : i32, i32
  }
  func.func @transform_2(%arg0: i32) -> (i32, i32) {
    %c0_i32 = arith.constant 0 : i32
    %c0_i32_0 = arith.constant 0 : i32
    %c0_i32_1 = arith.constant 0 : i32
    return %c0_i32, %c0_i32_0 : i32, i32
  }
  func.func @transform_3(%arg0: i32) -> (i32, i32) {
    %c0_i32 = arith.constant 0 : i32
    %c0_i32_0 = arith.constant 0 : i32
    %c0_i32_1 = arith.constant 0 : i32
    return %c0_i32, %c0_i32_0 : i32, i32
  }
  func.func @transform_4(%arg0: i32) -> (i32, i32) {
    %c0_i32 = arith.constant 0 : i32
    %c0_i32_0 = arith.constant 0 : i32
    %c0_i32_1 = arith.constant 0 : i32
    return %c0_i32, %c0_i32_0 : i32, i32
  }
  func.func @transform_5(%arg0: i32) -> (i32, i32) {
    %c0_i32 = arith.constant 0 : i32
    %c0_i32_0 = arith.constant 0 : i32
    %c0_i32_1 = arith.constant 0 : i32
    return %c0_i32, %c0_i32_0 : i32, i32
  }
  func.func @transform_6(%arg0: i32) -> (i32, i32) {
    %c0_i32 = arith.constant 0 : i32
    %c0_i32_0 = arith.constant 0 : i32
    return %c0_i32, %arg0 : i32, i32
  }
}

</mosaic_0001>

<bundles_post_ra>
// kernel: tpu_custom_call.1
= control target key start
LH: loop header
LB: loop body
LE: loop exit
PB: predicated region body
PF: predicated region fallthrough
CT: control target
= control target key end

     0   :  { %11 = vsyncpa [#allocation4], 0  ;;  %s1402_s0 = inlined_call_operand.hbm [shape: f32[9,4,128], index: 0, kind: input, shape index: {}]   ;;  %s1403_s1 = inlined_call_operand.vmem [shape: f32[4,4], index: 1, kind: input, shape index: {}]   ;;  %s1404_s2 = inlined_call_operand.vmem [shape: f32[4,1], index: 2, kind: input, shape index: {}]   ;;  %s1405_s3 = inlined_call_operand.vmem [shape: f32[8,36], index: 3, kind: input, shape index: {}]   ;;  %s1406_s4 = inlined_call_operand.vmem [shape: f32[16,4], index: 4, kind: input, shape index: {}]   ;;  %s1407_s5 = inlined_call_operand.vmem [shape: f32[4,16], index: 5, kind: input, shape index: {}]   ;;  %s1408_s6 = inlined_call_operand.hbm [shape: f32[4,128], index: 6, kind: output, shape index: {}]  }
   0x1   :  { %12 = vsyncpa [#allocation5], 0  ;;  %s1230_s21 = smov [#allocation3]  }
   0x2   :  { %s18_s22 = sshll.u32 %s1230_s21, 4  ;;  %s19_s22 = int_to_ptr.vmem [resolvable:$true] %s18_s22 }
   0x3   :  { %s1194_s23 = scalar_lea.vmem %s19_s22, 576  ;;  %p1199_p1 = scmp.lt.s32.totalorder %s19_s22, %s19_s22 }
   0x4   :  { %p1195_p0 = scmp.ne.s32.totalorder %s19_s22, %s1194_s23  ;;  %p1200_p2 = scmp.lt.s32.totalorder %s1194_s23, %s1194_s23 }
   0x6   :  { %p1201_p3 = por %p1200_p2, %p1199_p1 }
   0x8   :  { %p1202_p4 = pnand %p1201_p3, %p1195_p0 }
   0xa   :  { %1205 = shalt.err (!%p1202_p4)
}
   0xb   :  { %s1231_s24 = smov 64   ;;  %s1232_s25 = smov 4  }
   0xc   :  { %24 = dma.hbm_to_vmem [thread:$0]  %s1402_s0, 576, %s19_s22, [#allocation4], %s1231_s24, %s1231_s24, %s1232_s25  }
   0xd   :  { %1226 = dma.done.wait [#allocation4], 576  }
   0xe   :  { %1227 = vsyncadd [#allocation4], 4294966720  ;;  %v1233_v0 = vmov 0.0   ;;  %vm1234_vm0 = vmmov 0   ;;  %v1235_v1 = vmov 0   ;;  %vm51_vm1 = vcmask 1043456  }
   0xf   :  { %1086 = vmatprep.subr.mxu0 %v1233_v0  ;;  %1091 = vmatprep.subr.mxu1 %v1233_v0  ;;  %v1281_v2 = vld [vmem:[#allocation3] sm:$0xf]  ;;  %v1283_v3 = vld [vmem:[#allocation3 + $0x4] sm:$0xf]  ;;  %vm47_vm2 = vcmask 31744   ;;  %vm766_vm3 = vcmask 293888  }
  0x10   :  { %1088 = vmatprep.mubr.msk.f32.mxu0 %vm1234_vm0, %v1233_v0  ;;  %1093 = vmatprep.mubr.msk.f32.mxu1 %vm1234_vm0, %v1233_v0  ;;  %v46_v4 = vmul.f32 %v1281_v2, %v1281_v2  ;;  %v130_v5 = vmul.f32 %v1283_v3, %v1283_v3  ;;  %v38_v6 = vld [vmem:[%s1403_s1] sm:$0xf]  ;;  %v1292_v7 = vld [vmem:[#allocation3 + $0x8] sm:$0xf]  ;;  %v1294_v8 = vld [vmem:[#allocation3 + $0xc] sm:$0xf] }
  0x11   :  { %1163 = vset.pattern.permute.xlu0 %v1235_v1  ;;  %v209_v9 = vmul.f32 %v1292_v7, %v1292_v7  ;;  %v288_v10 = vmul.f32 %v1294_v8, %v1294_v8  ;;  %v1302_v11 = vld [vmem:[#allocation3 + $0x10] sm:$0xf]  ;;  %v1306_v12 = vld [vmem:[#allocation3 + $0x14] sm:$0xf]  ;;  %v1320_v15 = vld [vmem:[#allocation3 + $0x18] sm:$0xf] }
  0x12   :  { %1087 = vmatpush3.msk.msra.mxu0 %vm51_vm1, %v46_v4  ;;  %1092 = vmatpush3.msk.msra.mxu1 %vm51_vm1, %v130_v5  ;;  %v367_v13 = vmul.f32 %v1302_v11, %v1302_v11  ;;  %v446_v14 = vmul.f32 %v1306_v12, %v1306_v12  ;;  %v1324_v16 = vld [vmem:[#allocation3 + $0x1c] sm:$0xf]  ;;  %v525_v17 = vmul.f32 %v1320_v15, %v1320_v15  ;;  %v1338_v19 = vld [vmem:[#allocation3 + $0x20] sm:$0xf]  ;;  %v39_v21 = vld [vmem:[%s1404_s2] sm:$0xf] }
  0x13   :  { %1089 = vmatmul.mubr.msk.f32.vlgmr.msra.gmra.mxu0 %vm47_vm2, %v38_v6  ;;  %1094 = vmatmul.mubr.msk.f32.vlgmr.msra.gmra.mxu1 %vm47_vm2, %v38_v6  ;;  %v604_v18 = vmul.f32 %v1324_v16, %v1324_v16  ;;  %v683_v20 = vmul.f32 %v1338_v19, %v1338_v19  ;;  %vm942_vm4 = vcmask 130048   ;;  %s1236_s11 = smov [#allocation6]  }
  0x14   :  { %1096 = vmatprep.subr.mxu0 %v1233_v0  ;;  %1101 = vmatprep.subr.mxu1 %v1233_v0  ;;  %s1023_s12 = sshll.u32 %s1236_s11, 4  ;;  %s1024_s12 = int_to_ptr.vmem [resolvable:$true] %s1023_s12 }
  0x15   :  { %1097 = vmatpush3.msk.msra.mxu0 %vm51_vm1, %v209_v9  ;;  %1098 = vmatprep.mubr.msk.f32.mxu0 %vm1234_vm0, %v1233_v0  ;;  %v760_v9 = vld [vmem:[%s1405_s3] sm:$0xff]  ;;  %s1206_s13 = scalar_lea.vmem %s1024_s12, 64  ;;  %p1211_p6 = scmp.lt.s32.totalorder %s1024_s12, %s1024_s12 }
  0x16   :  { %1102 = vmatpush3.msk.msra.mxu1 %vm51_vm1, %v288_v10  ;;  %1103 = vmatprep.mubr.msk.f32.mxu1 %vm1234_vm0, %v1233_v0  ;;  %p1207_p5 = scmp.ne.s32.totalorder %s1024_s12, %s1206_s13  ;;  %p1212_p7 = scmp.lt.s32.totalorder %s1206_s13, %s1206_s13 }
  0x17   :  { %1099 = vmatmul.mubr.msk.f32.vlgmr.msra.gmra.mxu0 %vm47_vm2, %v38_v6  ;;  %1104 = vmatmul.mubr.msk.f32.vlgmr.msra.gmra.mxu1 %vm47_vm2, %v38_v6 }
  0x18   :  { %1106 = vmatprep.subr.mxu0 %v1233_v0  ;;  %1111 = vmatprep.subr.mxu1 %v1233_v0  ;;  %p1213_p8 = por %p1212_p7, %p1211_p6 }
  0x19   :  { %1107 = vmatpush3.msk.msra.mxu0 %vm51_vm1, %v367_v13  ;;  %1108 = vmatprep.mubr.msk.f32.mxu0 %vm1234_vm0, %v1233_v0  ;;  %v844_v13 = vld [vmem:[%s1406_s4 + $0x8] sm:$0xff] }
  0x1a   :  { %1112 = vmatpush3.msk.msra.mxu1 %vm51_vm1, %v446_v14  ;;  %1113 = vmatprep.mubr.msk.f32.mxu1 %vm1234_vm0, %v1233_v0  ;;  %p1214_p9 = pnand %p1213_p8, %p1207_p5 }
  0x1b   :  { %1109 = vmatmul.mubr.msk.f32.vlgmr.msra.gmra.mxu0 %vm47_vm2, %v38_v6  ;;  %1114 = vmatmul.mubr.msk.f32.vlgmr.msra.gmra.mxu1 %vm47_vm2, %v38_v6 }
  0x1c   :  { %1116 = vmatprep.subr.mxu0 %v1233_v0  ;;  %1121 = vmatprep.subr.mxu1 %v1233_v0 }
  0x1d   :  { %1117 = vmatpush3.msk.msra.mxu0 %vm51_vm1, %v525_v17  ;;  %1118 = vmatprep.mubr.msk.f32.mxu0 %vm1234_vm0, %v1233_v0 }
  0x1e   :  { %1122 = vmatpush3.msk.msra.mxu1 %vm51_vm1, %v604_v18  ;;  %1123 = vmatprep.mubr.msk.f32.mxu1 %vm1234_vm0, %v1233_v0 }
  0x1f   :  { %1119 = vmatmul.mubr.msk.f32.vlgmr.msra.gmra.mxu0 %vm47_vm2, %v38_v6  ;;  %1124 = vmatmul.mubr.msk.f32.vlgmr.msra.gmra.mxu1 %vm47_vm2, %v38_v6 }
  0x20   :  { %1126 = vmatprep.subr.mxu0 %v1233_v0  ;;  %1128 = vmatprep.mubr.msk.f32.mxu0 %vm1234_vm0, %v1233_v0 }
  0x21   :  { %1127 = vmatpush3.msk.msra.mxu0 %vm51_vm1, %v683_v20  ;;  %42 = vperm.xlu0 %1163, %v39_v21  }
  0x22   :  { %1131 = vmatprep.subr.mxu1 %v1233_v0  ;;  %1141 = vmatprep.mubr.msk.f32.mxu1 %vm1234_vm0, %v1233_v0 }
  0x23   :  { %1129 = vmatmul.mubr.msk.f32.vlgmr.msra.gmra.mxu0 %vm47_vm2, %v38_v6 }
  0x9c   :  { %v43_v22 = vpop.permute.xlu0 %42 }
  0xd3   :  { %v121_v23 = vpop.f32.mrf.mxu0  ;;  %v200_v24 = vpop.f32.mrf.mxu1 }
  0xd4   :  { %v122_v25 = vadd.f32 %v121_v23, %v43_v22  ;;  %v201_v26 = vadd.f32 %v200_v24, %v43_v22 }
  0xd5   :  { %v1090_v27 = vpop.f32.mrf.mxu0  ;;  %v1095_v28 = vpop.f32.mrf.mxu1 }
  0xd6   :  { %1164 = vrsqrt.f32 %v122_v25  ;;  %v845_v27 = vld [vmem:[%s1407_s5] sm:$0xf] }
  0xd7   :  { %1166 = vrsqrt.f32 %v201_v26  ;;  %v279_v29 = vpop.f32.mrf.mxu0  ;;  %v358_v30 = vpop.f32.mrf.mxu1 }
  0xd8   :  { %v280_v31 = vadd.f32 %v279_v29, %v43_v22  ;;  %v359_v32 = vadd.f32 %v358_v30, %v43_v22 }
  0xd9   :  { %v1100_v33 = vpop.f32.mrf.mxu0  ;;  %v1105_v34 = vpop.f32.mrf.mxu1 }
  0xda   :  { %1168 = vrsqrt.f32 %v280_v31 }
  0xdb   :  { %1170 = vrsqrt.f32 %v359_v32  ;;  %v437_v35 = vpop.f32.mrf.mxu0  ;;  %v516_v36 = vpop.f32.mrf.mxu1 }
  0xdc   :  { %v438_v37 = vadd.f32 %v437_v35, %v43_v22  ;;  %v517_v38 = vadd.f32 %v516_v36, %v43_v22 }
  0xdd   :  { %v1110_v39 = vpop.f32.mrf.mxu0  ;;  %v1115_v40 = vpop.f32.mrf.mxu1 }
  0xde   :  { %1172 = vrsqrt.f32 %v438_v37 }
  0xdf   :  { %1174 = vrsqrt.f32 %v517_v38  ;;  %v595_v41 = vpop.f32.mrf.mxu0  ;;  %v674_v42 = vpop.f32.mrf.mxu1 }
  0xe0   :  { %v596_v43 = vadd.f32 %v595_v41, %v43_v22  ;;  %v675_v44 = vadd.f32 %v674_v42, %v43_v22 }
  0xe1   :  { %v1120_v45 = vpop.f32.mrf.mxu0  ;;  %v1125_v46 = vpop.f32.mrf.mxu1 }
  0xe2   :  { %1176 = vrsqrt.f32 %v596_v43 }
  0xe3   :  { %v1165_v47 = vpop.eup %1164  ;;  %1178 = vrsqrt.f32 %v675_v44  ;;  %v753_v48 = vpop.f32.mrf.mxu0 }
  0xe4   :  { %v1167_v49 = vpop.eup %1166  ;;  %v126_v50 = vmul.f32 %v1165_v47, %v1281_v2  ;;  %v754_v51 = vadd.f32 %v753_v48, %v43_v22 }
  0xe5   :  { %v205_v52 = vmul.f32 %v1167_v49, %v1283_v3  ;;  %v1130_v53 = vpop.f32.mrf.mxu0 }
  0xe6   :  { %127 = vst [vmem:[#allocation2] sm:$0xf] %v126_v50  ;;  %1180 = vrsqrt.f32 %v754_v51 }
  0xe7   :  { %v1169_v54 = vpop.eup %1168  ;;  %206 = vst [vmem:[#allocation2 + $0x4] sm:$0xf] %v205_v52 }
  0xe8   :  { %v1171_v55 = vpop.eup %1170  ;;  %v284_v56 = vmul.f32 %v1169_v54, %v1292_v7 }
  0xe9   :  { %v363_v57 = vmul.f32 %v1171_v55, %v1294_v8 }
  0xea   :  { %285 = vst [vmem:[#allocation2 + $0x8] sm:$0xf] %v284_v56 }
  0xeb   :  { %v1173_v58 = vpop.eup %1172  ;;  %364 = vst [vmem:[#allocation2 + $0xc] sm:$0xf] %v363_v57 }
  0xec   :  { %v1175_v59 = vpop.eup %1174  ;;  %v442_v60 = vmul.f32 %v1173_v58, %v1302_v11  ;;  %v843_v11 = vld [vmem:[%s1406_s4] sm:$0xff] }
  0xed   :  { %v521_v61 = vmul.f32 %v1175_v59, %v1306_v12  ;;  %1146 = vmatprep.mubr.msk.f32.mxu0 %vm47_vm2, %v843_v11 }
  0xee   :  { %443 = vst [vmem:[#allocation2 + $0x10] sm:$0xf] %v442_v60  ;;  %v761_v10 = vld [vmem:[#allocation2] sm:$0xff] }
  0xef   :  { %v1177_v62 = vpop.eup %1176  ;;  %522 = vst [vmem:[#allocation2 + $0x14] sm:$0xf] %v521_v61 }
  0xf0   :  { %v1179_v63 = vpop.eup %1178  ;;  %v600_v1 = vmul.f32 %v1177_v62, %v1320_v15 }
  0xf1   :  { %v679_v2 = vmul.f32 %v1179_v63, %v1324_v16 }
  0xf2   :  { %601 = vst [vmem:[#allocation2 + $0x18] sm:$0xf] %v600_v1  ;;  %v762_v8 = vld [vmem:[#allocation2 + $0x8] sm:$0xff] }
  0xf3   :  { %v1181_v3 = vpop.eup %1180  ;;  %680 = vst [vmem:[#allocation2 + $0x1c] sm:$0xf] %v679_v2 }
  0xf4   :  { %v758_v4 = vmul.f32 %v1181_v3, %v1338_v19 }
  0xf6   :  { %759 = vst [vmem:[#allocation2 + $0x20] sm:$0xf] %v758_v4  ;;  %v763_v7 = vld [vmem:[#allocation2 + $0x10] sm:$0xff] }
  0xfa   :  { %v764_v6 = vld [vmem:[#allocation2 + $0x18] sm:$0xff] }
  0xfd   :  { %v765_v5 = vld [vmem:[#allocation2 + $0x20] sm:$0xf] }
  0xfe   :  { %1132 = vmatpush3.msk.msra.mxu1 %vm51_vm1, %v765_v5 }
  0xff   :  { %1133 = vmatprep.subr.mxu1 %v1233_v0 }
 0x100   :  { %1134 = vmatpush3.msra.mxu1 %v764_v6 }
 0x101   :  { %1135 = vmatprep.subr.mxu1 %v1233_v0 }
 0x102   :  { %1136 = vmatpush3.msra.mxu1 %v763_v7 }
 0x103   :  { %1137 = vmatprep.subr.mxu1 %v1233_v0 }
 0x104   :  { %1138 = vmatpush3.msra.mxu1 %v762_v8 }
 0x105   :  { %1139 = vmatprep.subr.mxu1 %v1233_v0 }
 0x106   :  { %1140 = vmatpush3.msra.mxu1 %v761_v10 }
 0x107   :  { %1142 = vmatmul.mubr.msk.f32.vlgmr.msra.gmra.mxu1 %vm766_vm3, %v760_v9 }
 0x1c7   :  { %v839_v12 = vpop.f32.mrf.mxu1 }
 0x1c8   :  { %1144 = vmatprep.subr.msk.mxu0 %vm51_vm1, %v839_v12  ;;  %v940_v28 = vrot.slane %v839_v12, 4 }
 0x1c9   :  { %v1143_v14 = vpop.f32.mrf.mxu1  ;;  %1145 = vmatpush3.msk.msra.mxu0 %vm51_vm1, %v839_v12 }
 0x1ca   :  { %1147 = vmatmul.mubr.msk.f32.vlgmr.msra.gmra.mxu0 %vm47_vm2, %v844_v13  ;;  %1149 = vmatprep.subr.mxu0 %v1233_v0 }
 0x1cb   :  { %1153 = vmatprep.mubr.msk.f32.mxu0 %vm1234_vm0, %v1233_v0 }
 0x28a   :  { %v1148_v15 = vpop.f32.mrf.mxu0 }
 0x28b   :  { %v933_v16 = vmul.f32 0.70710677, %v1148_v15  ;;  %v931_v20 = vmul.f32 0.5, %v1148_v15 }
 0x28c   :  { %v921_v17 = vpop.f32.mrf.mxu0 }
 0x28d   :  { %1182 = verf.f32 %v933_v16  ;;  %v932_v18 = vmul.f32 0.70710677, %v921_v17  ;;  %v930_v24 = vmul.f32 0.5, %v921_v17 }
 0x28f   :  { %1184 = verf.f32 %v932_v18 }
 0x29a   :  { %v1183_v19 = vpop.eup %1182 }
 0x29b   :  { %v937_v21 = vadd.f32 1.0, %v1183_v19 }
 0x29c   :  { %v1185_v22 = vpop.eup %1184 }
 0x29d   :  { %v939_v23 = vmul.f32 %v937_v21, %v931_v20  ;;  %v936_v25 = vadd.f32 1.0, %v1185_v22 }
 0x29f   :  { %v938_v26 = vmul.f32 %v936_v25, %v930_v24  ;;  %1150 = vmatpush3.msra.mxu0 %v939_v23 }
 0x2a0   :  { %1151 = vmatprep.subr.mxu0 %v1233_v0 }
 0x2a1   :  { %1152 = vmatpush3.msra.mxu0 %v938_v26 }
 0x2a2   :  { %1154 = vmatmul.mubr.msk.f32.vlgmr.msra.gmra.mxu0 %vm942_vm4, %v845_v27 }
 0x362   :  { %v1012_v29 = vpop.f32.mrf.mxu0 }
 0x363   :  { %v1013_v30 = vadd.f32 %v1012_v29, %v940_v28 }
 0x364   :  { %v1155_v31 = vpop.f32.mrf.mxu0 }
 0x365   :  { %1016 = vst [vmem:[#allocation6] sm:$0xf] %v1013_v30 }
 0x366   :  { %1217 = shalt.err (!%p1214_p9)
}
 0x367   :  { %1026 = dma.vmem_to_hbm [thread:$0]  %s1024_s12, 64, %s1408_s6, [#allocation5]  }
 0x368   :  { %1228 = dma.done.wait [#allocation5], 64  }
 0x369   :  { %1229 = vsyncadd [#allocation5], 4294967232 }
 0x36a   :  { %1030 = vsyncpa [#allocation4], 1 }
 0x36b   :  { %1031 = vsyncpa [#allocation5], 1 }

</bundles_post_ra>
